<compile_context>
chip_gen: v7x
topology: tpu7x:2x2x1
jax: 0.10.0
libtpu: 0.0.40
codegen_flags: <defaults>
</compile_context>

<pallas_src>
import functools

import jax
import jax.numpy as jnp
import numpy as np
from jax.experimental import pallas as pl
from jax.experimental.pallas import tpu as pltpu


def _gated_cnn_kernel(x_ref, w_ref, b_ref, out_ref, xp_ref, *, K, pad_left,
                      pad_right):
    """One batch tile per grid step.

    x_ref  : (Bt, S, H)          input block, compute dtype (f32 or bf16)
    w_ref  : (K, H, 2H)          fused [conv | gate] weights, compute dtype
    b_ref  : (1, 2H)             fused [conv | gate] bias, f32
    out_ref: (Bt, S, H)          output block (original dtype)
    xp_ref : (Bt, S + K - 1, H)  VMEM scratch holding the zero-padded window
    """
    Bt, S, H = out_ref.shape
    M = Bt * S

    # --- in-VMEM "same" padding -------------------------------------------
    # Scratch persists across grid steps and is per-core, so the halo is
    # re-zeroed every step (zeroing only at program_id==0 would be wrong under
    # megacore partitioning of the parallel batch axis).  It is only (K-1)
    # rows, essentially free.
    if pad_left:
        xp_ref[:, :pad_left, :] = jnp.zeros((Bt, pad_left, H), xp_ref.dtype)
    if pad_right:
        xp_ref[:, pad_left + S:, :] = jnp.zeros((Bt, pad_right, H),
                                                xp_ref.dtype)
    xp_ref[:, pad_left:pad_left + S, :] = x_ref[...]

    # --- fused conv + gate: K shifted matmuls, f32 accumulation ------------
    acc = jnp.broadcast_to(b_ref[...], (M, 2 * H)).astype(jnp.float32)
    for k in range(K):  # K is small (e.g. 3); static unroll is fine
        xs = xp_ref[:, k:k + S, :].reshape(M, H)
        acc = acc + jnp.dot(xs, w_ref[k], preferred_element_type=jnp.float32)

    # --- gating epilogue in f32, cast only at the final store --------------
    a = acc[:, :H]
    g = acc[:, H:]
    y = a * jax.nn.sigmoid(g)
    out_ref[...] = y.reshape(Bt, S, H).astype(out_ref.dtype)


def _pick_batch_tile(B, S, H, K, itemsize):
    """Choose how many batch elements to fold into one grid step."""
    # Target ~256 rows of M per step for MXU fill ...
    bt = max(1, -(-256 // max(S, 1)))
    # ... but cap the per-step VMEM footprint (2x in + 2x out buffers + padded
    # scratch) so big shapes stay well inside v7x's 64 MiB VMEM.
    per_batch = max(1, (S + K - 1) * H * itemsize * 5)
    bt = min(bt, max(1, (24 * 1024 * 1024) // per_batch))
    if B < 2 * bt:
        # Small problem: per-step pipeline overhead dominates -> one big step.
        bt = B
    bt = max(1, min(bt, B))
    while B % bt:  # keep the grid exact
        bt -= 1
    return bt


def gated_cnn(x, w_cnn, b_cnn, w_gate, b_gate, *,
              compute_dtype=jnp.float32, batch_tile=None):
    """x: (B, S, H); w_*: (H_out, H_in, K) PyTorch Conv1d layout; b_*: (H,)."""
    B, S, H = x.shape
    K = w_cnn.shape[-1]

    # PyTorch padding='same' (stride=1, dilation=1): left = (K-1)//2.
    pad_left = (K - 1) // 2
    pad_right = (K - 1) - pad_left

    # Fuse conv + gate: w_cat[k, i, :H] = conv, w_cat[k, i, H:] = gate.
    wc = jnp.transpose(w_cnn, (2, 1, 0))            # (K, H_in, H_out)
    wg = jnp.transpose(w_gate, (2, 1, 0))
    w_cat = jnp.concatenate([wc, wg], axis=-1).astype(compute_dtype)
    b_cat = jnp.concatenate([b_cnn, b_gate]).reshape(1, 2 * H).astype(
        jnp.float32)

    # Narrow MXU / DMA dtype (bf16 halves HBM bytes + VMEM); no HBM-side pad.
    x_c = x.astype(compute_dtype)
    itemsize = jnp.dtype(compute_dtype).itemsize

    Bt = batch_tile if batch_tile is not None else _pick_batch_tile(
        B, S, H, K, itemsize)
    grid = (B // Bt,)
    S_pad = S + K - 1

    # TODO(synk): for very long sequences (e.g. S*H*4B per batch approaching
    # v7x's 64 MiB VMEM) also tile the sequence axis with a (K-1)-row halo.

    kernel = functools.partial(_gated_cnn_kernel, K=K, pad_left=pad_left,
                               pad_right=pad_right)

    flops = 4 * B * S * K * H * H                    # two convs, 2*K*H flops/out
    bytes_accessed = (x_c.size * itemsize + w_cat.size * itemsize
                      + b_cat.size * 4 + B * S * H * jnp.dtype(x.dtype).itemsize)

    return pl.pallas_call(
        kernel,
        out_shape=jax.ShapeDtypeStruct((B, S, H), x.dtype),
        grid_spec=pltpu.PrefetchScalarGridSpec(
            num_scalar_prefetch=0,
            grid=grid,
            in_specs=[
                pl.BlockSpec((Bt, S, H), lambda b: (b, 0, 0)),
                # Constant index_map -> weights/bias are DMA'd only once.
                # NOTE: for large H, additionally request single-buffering
                # (pipeline_mode=pl.Buffered(1)) or copy once into scratch to
                # drop the second weight buffer (saves VMEM on v7x's 64 MiB).
                pl.BlockSpec((K, H, 2 * H), lambda b: (0, 0, 0)),
                pl.BlockSpec((1, 2 * H), lambda b: (0, 0)),
            ],
            # NOTE: last dim H (=32 here) < 128 -> masked stores; folding S
            # into lanes would need an in-kernel relayout, so it is left as-is.
            out_specs=pl.BlockSpec((Bt, S, H), lambda b: (b, 0, 0)),
            scratch_shapes=[pltpu.VMEM((Bt, S_pad, H), compute_dtype)],
        ),
        compiler_params=pltpu.CompilerParams(
            dimension_semantics=("parallel",),
            vmem_limit_bytes=32 * 1024 * 1024,
        ),
        cost_estimate=pl.CostEstimate(
            flops=int(flops),
            transcendentals=int(B * S * H),          # sigmoid
            bytes_accessed=int(bytes_accessed),
        ),
    )(x_c, w_cat, b_cat)


# ----------------------------------------------------------------------------
# Pure-JAX reference mirroring nn.Conv1d(padding='same') on (B, S, H).
# ----------------------------------------------------------------------------
def _conv1d_same_ref(x_bsh, w_oik, bias):
    K = w_oik.shape[-1]
    pad_left = (K - 1) // 2
    pad_right = (K - 1) - pad_left
    x_nch = jnp.transpose(x_bsh, (0, 2, 1))
    y = jax.lax.conv_general_dilated(
        x_nch, w_oik, window_strides=(1,),
        padding=[(pad_left, pad_right)],
        dimension_numbers=('NCH', 'OIH', 'NCH'))
    y = y + bias[None, :, None]
    return jnp.transpose(y, (0, 2, 1))


def _gated_cnn_ref(x, w_cnn, b_cnn, w_gate, b_gate):
    a = _conv1d_same_ref(x, w_cnn, b_cnn)
    b = jax.nn.sigmoid(_conv1d_same_ref(x, w_gate, b_gate))
    return a * b


if __name__ == "__main__":
    # config = {'hidden_size': 32, 'kernel_size': 3}; input x: (batch, seq, hidden)
    B, S, H, K = 2, 8, 32, 3

    key = jax.random.PRNGKey(0)
    kx, kwc, kbc, kwg, kbg = jax.random.split(key, 5)

    x = jax.random.normal(kx, (B, S, H), dtype=jnp.float32)

    # Deterministic init matching nn.Conv1d's uniform(-bound, bound) shapes.
    bound = 1.0 / np.sqrt(H * K)
    w_cnn = jax.random.uniform(kwc, (H, H, K), jnp.float32, -bound, bound)
    b_cnn = jax.random.uniform(kbc, (H,), jnp.float32, -bound, bound)
    w_gate = jax.random.uniform(kwg, (H, H, K), jnp.float32, -bound, bound)
    b_gate = jax.random.uniform(kbg, (H,), jnp.float32, -bound, bound)

    ref = _gated_cnn_ref(x, w_cnn, b_cnn, w_gate, b_gate)

    # f32 path: must match the PyTorch/conv reference tightly.
    out = jax.block_until_ready(gated_cnn(x, w_cnn, b_cnn, w_gate, b_gate))
    np.testing.assert_allclose(np.asarray(out), np.asarray(ref),
                               rtol=1e-5, atol=1e-5)

    # bf16-MXU path (f32 accumulation + f32 epilogue): compare against the
    # reference evaluated on the same bf16-rounded inputs so the check
    # isolates kernel correctness from the intentional dtype narrowing.
    out_bf16 = jax.block_until_ready(
        gated_cnn(x, w_cnn, b_cnn, w_gate, b_gate,
                  compute_dtype=jnp.bfloat16))
    x_r = x.astype(jnp.bfloat16).astype(jnp.float32)
    wc_r = w_cnn.astype(jnp.bfloat16).astype(jnp.float32)
    wg_r = w_gate.astype(jnp.bfloat16).astype(jnp.float32)
    ref_bf16 = _gated_cnn_ref(x_r, wc_r, b_cnn, wg_r, b_gate)
    np.testing.assert_allclose(np.asarray(out_bf16), np.asarray(ref_bf16),
                               rtol=1e-4, atol=1e-4)

    print("KERNEL_OK")
</pallas_src>

<mosaic_0001>
module attributes {stable_mosaic.version = 11 : i64} {
  func.func @_gated_cnn_kernel(%arg0: i32, %arg1: memref<2x8x32xf32, #tpu.memory_space<vmem>>, %arg2: memref<3x32x64xf32, #tpu.memory_space<vmem>>, %arg3: memref<1x64xf32, #tpu.memory_space<vmem>>, %arg4: memref<2x8x32xf32, #tpu.memory_space<vmem>>, %arg5: memref<2x10x32xf32, #tpu.memory_space<vmem>>) attributes {dimension_semantics = [#tpu.dimension_semantics<parallel>], iteration_bounds = array<i64: 1>, scalar_prefetch = 0 : i64, scratch_operands = 1 : i64, tpu.core_type = #tpu.core_type<tc>, window_params = [{transform_indices = @transform_0, window_bounds = array<i64: 2, 8, 32>}, {pipeline_mode = #tpu.pipeline_mode<synchronous>, transform_indices = @transform_1, window_bounds = array<i64: 3, 32, 64>}, {pipeline_mode = #tpu.pipeline_mode<synchronous>, transform_indices = @transform_2, window_bounds = array<i64: 1, 64>}, {transform_indices = @transform_3, window_bounds = array<i64: 2, 8, 32>}]} {
    %cst = arith.constant 0.000000e+00 : f32
    %0 = vector.broadcast %cst : f32 to vector<2x1x32xf32>
    %c0 = arith.constant 0 : index
    %c0_0 = arith.constant 0 : index
    %c0_1 = arith.constant 0 : index
    %1 = vector.load %arg5[%c0, %c0_0, %c0_1] : memref<2x10x32xf32, #tpu.memory_space<vmem>>, vector<2x1x32xf32>
    tpu.vector_store %arg5[%c0, %c0_0, %c0_1], %0 {strides = array<i32>} : memref<2x10x32xf32, #tpu.memory_space<vmem>>, vector<2x1x32xf32>,
    %cst_2 = arith.constant 0.000000e+00 : f32
    %2 = vector.broadcast %cst_2 : f32 to vector<2x1x32xf32>
    %c0_3 = arith.constant 0 : index
    %c9 = arith.constant 9 : index
    %c0_4 = arith.constant 0 : index
    %3 = vector.load %arg5[%c0_3, %c9, %c0_4] : memref<2x10x32xf32, #tpu.memory_space<vmem>>, vector<2x1x32xf32>
    tpu.vector_store %arg5[%c0_3, %c9, %c0_4], %2 {strides = array<i32>} : memref<2x10x32xf32, #tpu.memory_space<vmem>>, vector<2x1x32xf32>,
    %c0_5 = arith.constant 0 : index
    %c0_6 = arith.constant 0 : index
    %c0_7 = arith.constant 0 : index
    %4 = vector.load %arg1[%c0_5, %c0_6, %c0_7] : memref<2x8x32xf32, #tpu.memory_space<vmem>>, vector<2x8x32xf32>
    %c0_8 = arith.constant 0 : index
    %c1 = arith.constant 1 : index
    %c0_9 = arith.constant 0 : index
    %5 = vector.load %arg5[%c0_8, %c1, %c0_9] : memref<2x10x32xf32, #tpu.memory_space<vmem>>, vector<2x8x32xf32>
    tpu.vector_store %arg5[%c0_8, %c1, %c0_9], %4 {strides = array<i32>} : memref<2x10x32xf32, #tpu.memory_space<vmem>>, vector<2x8x32xf32>,
    %c0_10 = arith.constant 0 : index
    %c0_11 = arith.constant 0 : index
    %6 = vector.load %arg3[%c0_10, %c0_11] : memref<1x64xf32, #tpu.memory_space<vmem>>, vector<1x64xf32>
    %7 = vector.shape_cast %6 : vector<1x64xf32> to vector<1x64xf32>
    %8 = vector.broadcast %7 : vector<1x64xf32> to vector<16x64xf32>
    %c0_12 = arith.constant 0 : index
    %c0_13 = arith.constant 0 : index
    %c0_14 = arith.constant 0 : index
    %9 = vector.load %arg5[%c0_12, %c0_13, %c0_14] : memref<2x10x32xf32, #tpu.memory_space<vmem>>, vector<2x8x32xf32>
    %10 = vector.shape_cast %9 : vector<2x8x32xf32> to vector<16x32xf32>
    %c0_15 = arith.constant 0 : index
    %c0_16 = arith.constant 0 : index
    %c0_17 = arith.constant 0 : index
    %11 = vector.load %arg2[%c0_15, %c0_16, %c0_17] : memref<3x32x64xf32, #tpu.memory_space<vmem>>, vector<1x32x64xf32>
    %12 = vector.shape_cast %11 : vector<1x32x64xf32> to vector<32x64xf32>
    %cst_18 = arith.constant dense<0.000000e+00> : vector<16x64xf32>
    %13 = tpu.matmul %10, %12, %cst_18 {dimension_numbers = #tpu.dot_dimension_numbers<[1], [0], [0], [1], [0, 0, 1, 1], [], []>} : vector<16x32xf32>, vector<32x64xf32>, vector<16x64xf32> -> vector<16x64xf32>
    %14 = arith.addf %8, %13 : vector<16x64xf32>
    %c0_19 = arith.constant 0 : index
    %c1_20 = arith.constant 1 : index
    %c0_21 = arith.constant 0 : index
    %15 = vector.load %arg5[%c0_19, %c1_20, %c0_21] : memref<2x10x32xf32, #tpu.memory_space<vmem>>, vector<2x8x32xf32>
    %16 = vector.shape_cast %15 : vector<2x8x32xf32> to vector<16x32xf32>
    %c1_22 = arith.constant 1 : index
    %c0_23 = arith.constant 0 : index
    %c0_24 = arith.constant 0 : index
    %17 = vector.load %arg2[%c1_22, %c0_23, %c0_24] : memref<3x32x64xf32, #tpu.memory_space<vmem>>, vector<1x32x64xf32>
    %18 = vector.shape_cast %17 : vector<1x32x64xf32> to vector<32x64xf32>
    %cst_25 = arith.constant dense<0.000000e+00> : vector<16x64xf32>
    %19 = tpu.matmul %16, %18, %cst_25 {dimension_numbers = #tpu.dot_dimension_numbers<[1], [0], [0], [1], [0, 0, 1, 1], [], []>} : vector<16x32xf32>, vector<32x64xf32>, vector<16x64xf32> -> vector<16x64xf32>
    %20 = arith.addf %14, %19 : vector<16x64xf32>
    %c0_26 = arith.constant 0 : index
    %c2 = arith.constant 2 : index
    %c0_27 = arith.constant 0 : index
    %21 = vector.load %arg5[%c0_26, %c2, %c0_27] : memref<2x10x32xf32, #tpu.memory_space<vmem>>, vector<2x8x32xf32>
    %22 = vector.shape_cast %21 : vector<2x8x32xf32> to vector<16x32xf32>
    %c2_28 = arith.constant 2 : index
    %c0_29 = arith.constant 0 : index
    %c0_30 = arith.constant 0 : index
    %23 = vector.load %arg2[%c2_28, %c0_29, %c0_30] : memref<3x32x64xf32, #tpu.memory_space<vmem>>, vector<1x32x64xf32>
    %24 = vector.shape_cast %23 : vector<1x32x64xf32> to vector<32x64xf32>
    %cst_31 = arith.constant dense<0.000000e+00> : vector<16x64xf32>
    %25 = tpu.matmul %22, %24, %cst_31 {dimension_numbers = #tpu.dot_dimension_numbers<[1], [0], [0], [1], [0, 0, 1, 1], [], []>} : vector<16x32xf32>, vector<32x64xf32>, vector<16x64xf32> -> vector<16x64xf32>
    %26 = arith.addf %20, %25 : vector<16x64xf32>
    %27 = vector.extract_strided_slice %26 {offsets = [0, 0], sizes = [16, 32], strides = [1, 1]} : vector<16x64xf32> to vector<16x32xf32>
    %28 = vector.extract_strided_slice %26 {offsets = [0, 32], sizes = [16, 32], strides = [1, 1]} : vector<16x64xf32> to vector<16x32xf32>
    %29 = arith.negf %28 : vector<16x32xf32>
    %30 = math.exp %29 : vector<16x32xf32>
    %cst_32 = arith.constant 1.000000e+00 : f32
    %31 = vector.broadcast %cst_32 : f32 to vector<16x32xf32>
    %32 = arith.addf %31, %30 : vector<16x32xf32>
    %33 = arith.divf %31, %32 : vector<16x32xf32>
    %34 = arith.mulf %27, %33 : vector<16x32xf32>
    %35 = vector.shape_cast %34 : vector<16x32xf32> to vector<2x8x32xf32>
    %c0_33 = arith.constant 0 : index
    %c0_34 = arith.constant 0 : index
    %c0_35 = arith.constant 0 : index
    %36 = vector.load %arg4[%c0_33, %c0_34, %c0_35] : memref<2x8x32xf32, #tpu.memory_space<vmem>>, vector<2x8x32xf32>
    tpu.vector_store %arg4[%c0_33, %c0_34, %c0_35], %35 {strides = array<i32>} : memref<2x8x32xf32, #tpu.memory_space<vmem>>, vector<2x8x32xf32>,
    return
  }
  func.func @transform_0(%arg0: i32) -> (i32, i32, i32) {
    %c0_i32 = arith.constant 0 : i32
    %c0_i32_0 = arith.constant 0 : i32
    %c0_i32_1 = arith.constant 0 : i32
    return %arg0, %c0_i32, %c0_i32_0 : i32, i32, i32
  }
  func.func @transform_1(%arg0: i32) -> (i32, i32, i32) {
    %c0_i32 = arith.constant 0 : i32
    %c0_i32_0 = arith.constant 0 : i32
    %c0_i32_1 = arith.constant 0 : i32
    %c0_i32_2 = arith.constant 0 : i32
    return %c0_i32, %c0_i32_0, %c0_i32_1 : i32, i32, i32
  }
  func.func @transform_2(%arg0: i32) -> (i32, i32) {
    %c0_i32 = arith.constant 0 : i32
    %c0_i32_0 = arith.constant 0 : i32
    %c0_i32_1 = arith.constant 0 : i32
    return %c0_i32, %c0_i32_0 : i32, i32
  }
  func.func @transform_3(%arg0: i32) -> (i32, i32, i32) {
    %c0_i32 = arith.constant 0 : i32
    %c0_i32_0 = arith.constant 0 : i32
    %c0_i32_1 = arith.constant 0 : i32
    return %arg0, %c0_i32, %c0_i32_0 : i32, i32, i32
  }
}

</mosaic_0001>

<bundles_post_ra>
// kernel: tpu_custom_call.1
= control target key start
LH: loop header
LB: loop body
LE: loop exit
PB: predicated region body
PF: predicated region fallthrough
CT: control target
= control target key end

     0   :  { %8 = vsyncpa [#allocation4], 0  ;;  %s633_s0 = inlined_call_operand.hbm [shape: f32[2,8,32], index: 0, kind: input, shape index: {}]   ;;  %s634_s1 = inlined_call_operand.hbm [shape: f32[3,32,64], index: 1, kind: input, shape index: {}]   ;;  %s635_s2 = inlined_call_operand.vmem [shape: f32[1,64], index: 2, kind: input, shape index: {}]   ;;  %s636_s3 = inlined_call_operand.hbm [shape: f32[2,8,32], index: 3, kind: output, shape index: {}]  }
   0x1   :  { %9 = vsyncpa [#allocation7], 0 }
   0x2   :  { %10 = vsyncpa [#allocation5], 0  ;;  %s548_s12 = smov [#allocation3]   ;;  %s476_s16 = scalar_lea.hbm %s633_s0, 256 }
   0x3   :  { %s16_s13 = sshll.u32 %s548_s12, 4  ;;  %p477_p0 = scmp.ne.s32.totalorder %s633_s0, %s476_s16  ;;  %s17_s13 = int_to_ptr.vmem [resolvable:$true] %s16_s13 }
   0x4   :  { %p480_p1 = scmp.lt.u32.totalorder %s476_s16, %s633_s0 }
   0x6   :  { %p482_p2 = pnand %p480_p1, %p477_p0 }
   0x8   :  { %485 = shalt.err (!%p482_p2)
}
   0x9   :  { %s486_s21 = scalar_lea.vmem %s17_s13, 256  ;;  %p491_p4 = scmp.lt.s32.totalorder %s17_s13, %s17_s13 }
   0xa   :  { %p487_p3 = scmp.ne.s32.totalorder %s17_s13, %s486_s21  ;;  %p492_p5 = scmp.lt.s32.totalorder %s486_s21, %s486_s21 }
   0xc   :  { %p493_p6 = por %p492_p5, %p491_p4 }
   0xe   :  { %p494_p7 = pnand %p493_p6, %p487_p3 }
  0x10   :  { %497 = shalt.err (!%p494_p7)
}
  0x11   :  { %s549_s22 = smov 128   ;;  %s550_s23 = smov 8  }
  0x12   :  { %22 = dma.hbm_to_vmem [thread:$0]  %s633_s0, 256, %s17_s13, [#allocation4], %s549_s22, %s549_s22, %s550_s23  }
  0x13   :  { %s551_s26 = smov [#allocation6]   ;;  %s498_s30 = scalar_lea.hbm %s634_s1, 1536 }
  0x14   :  { %s28_s27 = sshll.u32 %s551_s26, 4  ;;  %p499_p8 = scmp.ne.s32.totalorder %s634_s1, %s498_s30  ;;  %s29_s27 = int_to_ptr.vmem [resolvable:$true] %s28_s27 }
  0x15   :  { %p502_p9 = scmp.lt.u32.totalorder %s498_s30, %s634_s1 }
  0x17   :  { %p504_p10 = pnand %p502_p9, %p499_p8 }
  0x19   :  { %507 = shalt.err (!%p504_p10)
}
  0x1a   :  { %s508_s8 = scalar_lea.vmem %s29_s27, 1536  ;;  %p513_p12 = scmp.lt.s32.totalorder %s29_s27, %s29_s27 }
  0x1b   :  { %p509_p11 = scmp.ne.s32.totalorder %s29_s27, %s508_s8  ;;  %p514_p13 = scmp.lt.s32.totalorder %s508_s8, %s508_s8 }
  0x1d   :  { %p515_p0 = por %p514_p13, %p513_p12 }
  0x1f   :  { %p516_p1 = pnand %p515_p0, %p509_p11 }
  0x21   :  { %519 = shalt.err (!%p516_p1)
}
  0x22   :  { %34 = dma.hbm_to_vmem [thread:$0]  %s634_s1, 1536, %s29_s27, [#allocation7], %s549_s22, %s549_s22, %s550_s23  }
  0x23   :  { %542 = dma.done.wait [#allocation4], 256  }
  0x24   :  { %543 = vsyncadd [#allocation4], 4294967040 }
  0x25   :  { %544 = dma.done.wait [#allocation7], 1536  }
  0x26   :  { %545 = vsyncadd [#allocation7], 4294965760  ;;  %vm43_vm0 = vcmask 253952   ;;  %v552_v0 = vmov 0.0   ;;  %v152_v1 = vld [vmem:[#allocation6 + $0x20] sm:$0xff]  ;;  %v153_v2 = vld [vmem:[#allocation6 + $0x28] sm:$0xff] }
  0x27   :  { %44 = vst.msk [vmem:[#allocation2] sm:$0x1] %vm43_vm0, %v552_v0  ;;  %45 = vst.msk [vmem:[#allocation2 + $0x10] sm:$0x1] %vm43_vm0, %v552_v0  ;;  %v154_v3 = vld [vmem:[#allocation6 + $0x30] sm:$0xff]  ;;  %vm50_vm1 = vcmask 261120   ;;  %v439_v4 = vpack.c.bf16 %v153_v2, %v152_v1 }
  0x28   :  { %46 = vst.msk [vmem:[#allocation2 + $0x9] sm:$0x1] %vm43_vm0, %v552_v0  ;;  %47 = vst.msk [vmem:[#allocation2 + $0x19] sm:$0x1] %vm43_vm0, %v552_v0  ;;  %v155_v5 = vld [vmem:[#allocation6 + $0x38] sm:$0xff]  ;;  %v62_v6 = vld [vmem:[#allocation6] sm:$0xff] }
  0x29   :  { %v63_v7 = vld [vmem:[#allocation6 + $0x8] sm:$0xff]  ;;  %v443_v8 = vpack.c.bf16 %v155_v5, %v154_v3  ;;  %v48_v10 = vld [vmem:[#allocation3] sm:$0xff]  ;;  %v49_v11 = vld [vmem:[#allocation3 + $0x8] sm:$0xff]  ;;  %440 = vmatprep.subr.bf16.mxu0 %v439_v4  ;;  %s553_s11 = smov 96  }
  0x2a   :  { %v431_v9 = vpack.c.bf16 %v63_v7, %v62_v6  ;;  %v242_v12 = vld [vmem:[#allocation6 + $0x40] sm:$0xff]  ;;  %51 = vst.msk [vmem:[#allocation2 + $0x1] sm:$0xff] %vm50_vm1, %v48_v10  ;;  %52 = vst.msk [vmem:[#allocation2 + $0x11] sm:$0xff] %vm50_vm1, %v49_v11  ;;  %v243_v13 = vld [vmem:[#allocation6 + $0x48] sm:$0xff]  ;;  %442 = vmatpush3.bf16.msra.mxu0 %v439_v4 }
  0x2b   :  { %v64_v14 = vld [vmem:[#allocation6 + $0x10] sm:$0xff]  ;;  %v65_v15 = vld [vmem:[#allocation6 + $0x18] sm:$0xff]  ;;  %444 = vmatprep.subr.bf16.mxu0 %v443_v8  ;;  %v447_v17 = vpack.c.bf16 %v243_v13, %v242_v12 }
  0x2c   :  { %432 = vmatprep.subr.bf16.mxu1 %v431_v9  ;;  %v435_v16 = vpack.c.bf16 %v65_v15, %v64_v14  ;;  %v244_v18 = vld [vmem:[#allocation6 + $0x50] sm:$0xff]  ;;  %v245_v19 = vld [vmem:[#allocation6 + $0x58] sm:$0xff] }
  0x2d   :  { %434 = vmatpush3.bf16.msra.mxu1 %v431_v9  ;;  %v451_v22 = vpack.c.bf16 %v245_v19, %v244_v18  ;;  %v371_v29 = vld [vmem:[%s635_s2] ss:$0 sm:$0xff]  ;;  %s554_s2 = smov [#allocation8]  }
  0x2e   :  { %436 = vmatprep.subr.bf16.mxu1 %v435_v16  ;;  %446 = vmatpush3.bf16.msra.mxu0 %v443_v8  ;;  %s358_s12 = sshll.u32 %s554_s2, 4  ;;  %s359_s12 = int_to_ptr.vmem [resolvable:$true] %s358_s12 }
  0x2f   :  { %448 = vmatprep.subr.bf16.mxu0 %v447_v17  ;;  %s520_s13 = scalar_lea.vmem %s359_s12, 256  ;;  %p525_p3 = scmp.lt.s32.totalorder %s359_s12, %s359_s12 }
  0x30   :  { %p521_p2 = scmp.ne.s32.totalorder %s359_s12, %s520_s13  ;;  %p526_p4 = scmp.lt.s32.totalorder %s520_s13, %s520_s13 }
  0x31   :  { %438 = vmatpush3.bf16.msra.mxu1 %v435_v16  ;;  %v149_v20 = vld [vmem:[#allocation2 + $0x1] sm:$0xff]  ;;  %v150_v21 = vld [vmem:[#allocation2 + $0x11] sm:$0xff] }
  0x32   :  { %v60_v23 = vld [vmem:[#allocation2] sm:$0xff]  ;;  %417 = vmatprep.mubr.msk.f32.mxu0 %vm50_vm1, %v149_v20  ;;  %v61_v24 = vld [vmem:[#allocation2 + $0x10] sm:$0xff]  ;;  %p527_p5 = por %p526_p4, %p525_p3 }
  0x33   :  { %406 = vmatprep.mubr.msk.f32.mxu1 %vm50_vm1, %v60_v23  ;;  %v239_v25 = vld [vmem:[#allocation2 + $0x2] sm:$0xff]  ;;  %418 = vmatmul.mubr.msk.f32.vlgmr.msra.gmra.mrb[0].mxu0 %vm50_vm1, %v150_v21  ;;  %v240_v26 = vld [vmem:[#allocation2 + $0x12] sm:$0xff] }
  0x34   :  { %407 = vmatmul.mubr.msk.f32.vlgmr.msra.gmra.mrb[0].mxu1 %vm50_vm1, %v61_v24  ;;  %450 = vmatpush3.bf16.msra.mxu0 %v447_v17  ;;  %p528_p6 = pnand %p527_p5, %p521_p2 }
  0x35   :  { %428 = vmatprep.mubr.msk.f32.mxu0 %vm50_vm1, %v239_v25  ;;  %452 = vmatprep.subr.bf16.mxu0 %v451_v22 }
  0x38   :  { %454 = vmatpush3.bf16.msra.mxu0 %v451_v22 }
  0x3b   :  { %429 = vmatmul.mubr.msk.f32.vlgmr.msra.gmra.mrb[0].mxu0 %vm50_vm1, %v240_v26 }
 0x107   :  { %v408_v27 = vpop.f32.mrb[0].mxu1 }
 0x108   :  { %v138_v28 = vpop.f32.mrb[1].mxu1  ;;  %v148_v30 = vadd.f32 %v408_v27, %v371_v29 }
 0x109   :  { %v147_v31 = vadd.f32 %v371_v29, %v138_v28 }
 0x10e   :  { %v430_v32 = vpop.f32.mrb[0].mxu0 }
 0x10f   :  { %v456_v33 = vadd.f32 %v430_v32, %v148_v30  ;;  %v318_v34 = vpop.f32.mrb[1].mxu0 }
 0x110   :  { %v458_v35 = vadd.f32 %v318_v34, %v147_v31 }
 0x111   :  { %v379_v36 = vmul.f32 -1.442695, %v456_v33 }
 0x112   :  { %v378_v37 = vmul.f32 -1.442695, %v458_v35 }
 0x113   :  { %468 = vpow2.f32 %v379_v36 }
 0x114   :  { %470 = vpow2.f32 %v378_v37 }
 0x11d   :  { %v469_v38 = vpop.eup %468 }
 0x11e   :  { %v471_v39 = vpop.eup %470  ;;  %v336_v41 = vadd.f32 1.0, %v469_v38 }
 0x11f   :  { %v335_v40 = vadd.f32 1.0, %v471_v39 }
 0x121   :  { %472 = vrcp.f32 %v335_v40 }
 0x122   :  { %474 = vrcp.f32 %v336_v41 }
 0x12b   :  { %v473_v42 = vpop.eup %472 }
 0x12c   :  { %343 = vrot.lane.b32.xlu0 %v473_v42, %s553_s11  ;;  %v475_v43 = vpop.eup %474 }
 0x130   :  { %345 = vrot.lane.b32.xlu0 %v475_v43, %s553_s11 }
 0x19e   :  { %v344_v44 = vpop.permute.xlu0 %343 }
 0x19f   :  { %v349_v45 = vmul.f32 %v458_v35, %v344_v44 }
 0x1a1   :  { %351 = vst.msk [vmem:[#allocation8] sm:$0xff] %vm50_vm1, %v349_v45 }
 0x1a2   :  { %v346_v46 = vpop.permute.xlu0 %345 }
 0x1a3   :  { %v350_v47 = vmul.f32 %v456_v33, %v346_v46 }
 0x1a5   :  { %352 = vst.msk [vmem:[#allocation8 + $0x8] sm:$0xff] %vm50_vm1, %v350_v47 }
 0x1a6   :  { %531 = shalt.err (!%p528_p6)
}
 0x1a7   :  { %s532_s16 = scalar_lea.hbm %s636_s3, 256 }
 0x1a8   :  { %p533_p7 = scmp.ne.s32.totalorder %s636_s3, %s532_s16  ;;  %p536_p8 = scmp.lt.u32.totalorder %s532_s16, %s636_s3 }
 0x1aa   :  { %p538_p9 = pnand %p536_p8, %p533_p7 }
 0x1ac   :  { %541 = shalt.err (!%p538_p9)
}
 0x1ad   :  { %364 = dma.vmem_to_hbm [thread:$0]  %s359_s12, 256, %s636_s3, [#allocation5], %s549_s22, %s549_s22, %s550_s23  }
 0x1ae   :  { %546 = dma.done.wait [#allocation5], 256  }
 0x1af   :  { %547 = vsyncadd [#allocation5], 4294967040 }
 0x1b0   :  { %368 = vsyncpa [#allocation4], 1 }
 0x1b1   :  { %369 = vsyncpa [#allocation7], 1 }
 0x1b2   :  { %370 = vsyncpa [#allocation5], 1 }

</bundles_post_ra>
